<compile_context>
chip_gen: v5e
topology: v5e:2x2
jax: 0.10.0
libtpu: 0.0.40
codegen_flags: <defaults>
</compile_context>

<pallas_src>
import functools

import jax
import jax.numpy as jnp
from jax.experimental import pallas as pl
from jax.experimental.pallas import tpu as pltpu

_LANE = 128      # vreg lane width
_SUBLANE = 8     # f32 sublane count


def _copy_kernel(x_ref, o_ref):
    # Whole-tile, lane-dense copy.
    o_ref[...] = x_ref[...]


def _identity_copy_2d(x2d: jax.Array) -> jax.Array:
    """Tiled Pallas copy of a (rows, 128) lane-dense array."""
    rows, lanes = x2d.shape
    itemsize = jnp.dtype(x2d.dtype).itemsize

    # ~2 MiB per block buffer; with double-buffered input + output that is
    # ~8 MiB live -> under every generation's scoped-VMEM default.
    target_block_bytes = 2 * 1024 * 1024
    tb = min(rows, max(_SUBLANE, target_block_bytes // (lanes * itemsize)))
    tb = (tb // _SUBLANE) * _SUBLANE
    grid = (pl.cdiv(rows, tb),)

    return pl.pallas_call(
        _copy_kernel,
        out_shape=jax.ShapeDtypeStruct((rows, lanes), x2d.dtype),
        grid_spec=pl.GridSpec(
            grid=grid,
            in_specs=[pl.BlockSpec((tb, lanes), lambda i: (i, 0))],
            out_specs=pl.BlockSpec((tb, lanes), lambda i: (i, 0)),
        ),
        compiler_params=pltpu.CompilerParams(
            dimension_semantics=("parallel",),  # shard batch blocks across TCs (v7x)
        ),
        cost_estimate=pl.CostEstimate(
            flops=0,
            transcendentals=0,
            bytes_accessed=2 * rows * lanes * itemsize,
        ),
        # Identity: let XLA alias the (intermediate) input buffer as the output.
        input_output_aliases={0: 0},
    )(x2d)


@jax.jit
def _identity_copy(obs: jax.Array) -> jax.Array:
    """Materialized identity copy via the Pallas kernel (lane-dense repack)."""
    orig_shape = obs.shape
    n = obs.size
    flat = obs.reshape(-1)

    # Pad the flat length to a multiple of 8*128 so the 2-D view is (8k, 128):
    # lane-dense stores and (8,128)-aligned blocks for any batch/repr_dim.
    padded_rows = pl.cdiv(n, _SUBLANE * _LANE) * _SUBLANE
    padded_n = padded_rows * _LANE
    if padded_n != n:
        flat = jnp.pad(flat, (0, padded_n - n))
    x2d = flat.reshape(padded_rows, _LANE)

    y2d = _identity_copy_2d(x2d)
    return y2d.reshape(-1)[:n].reshape(orig_shape)


def identity_encoder(obs: jax.Array, materialize: bool = False) -> jax.Array:
    """Pallas/JAX implementation of IdentityEncoder.forward(obs) -> obs.

    Default path is a true zero-copy identity (matches `return obs`). Set
    materialize=True to force a distinct output buffer via the Pallas kernel.
    """
    if not materialize:
        return obs
    return _identity_copy(obs)


class IdentityEncoderJax:
    """Mirror of the PyTorch module: __init__ records repr_dim, forward is identity."""

    def __init__(self, obs_shape):
        assert len(obs_shape) == 1
        self.repr_dim = obs_shape[0]
        # No parameters (the PyTorch module has none).

    def __call__(self, obs):
        # Pure identity: no HBM traffic, no kernel launch.
        return identity_encoder(obs, materialize=False)


if __name__ == "__main__":
    key = jax.random.PRNGKey(0)
    batch, repr_dim = 2, 32
    obs = jax.random.normal(key, (batch, repr_dim), dtype=jnp.float32)

    # Fast path: zero-copy identity, exactly like the PyTorch module.
    encoder = IdentityEncoderJax((repr_dim,))
    out = jax.block_until_ready(encoder(obs))
    assert out.shape == obs.shape and out.dtype == obs.dtype
    assert out is obs or bool(jnp.array_equal(out, obs))

    # Also exercise the Pallas materialized-copy path on TPU.
    out_copy = jax.block_until_ready(identity_encoder(obs, materialize=True))
    assert out_copy.shape == obs.shape and out_copy.dtype == obs.dtype
    assert bool(jnp.array_equal(out_copy, obs))

    print("KERNEL_OK")
</pallas_src>

<mosaic_0001>
module attributes {stable_mosaic.version = 11 : i64} {
  func.func @_copy_kernel(%arg0: i32, %arg1: memref<8x128xf32, #tpu.memory_space<vmem>>, %arg2: memref<8x128xf32, #tpu.memory_space<vmem>>) attributes {dimension_semantics = [#tpu.dimension_semantics<parallel>], iteration_bounds = array<i64: 1>, scalar_prefetch = 0 : i64, scratch_operands = 0 : i64, tpu.core_type = #tpu.core_type<tc>, window_params = [{transform_indices = @transform_0, window_bounds = array<i64: 8, 128>}, {transform_indices = @transform_1, window_bounds = array<i64: 8, 128>}]} {
    %c0 = arith.constant 0 : index
    %c0_0 = arith.constant 0 : index
    %0 = vector.load %arg1[%c0, %c0_0] : memref<8x128xf32, #tpu.memory_space<vmem>>, vector<8x128xf32>
    %c0_1 = arith.constant 0 : index
    %c0_2 = arith.constant 0 : index
    %1 = vector.load %arg2[%c0_1, %c0_2] : memref<8x128xf32, #tpu.memory_space<vmem>>, vector<8x128xf32>
    tpu.vector_store %arg2[%c0_1, %c0_2], %0 {strides = array<i32>} : memref<8x128xf32, #tpu.memory_space<vmem>>, vector<8x128xf32>,
    return
  }
  func.func @transform_0(%arg0: i32) -> (i32, i32) {
    %c0_i32 = arith.constant 0 : i32
    %c0_i32_0 = arith.constant 0 : i32
    return %arg0, %c0_i32 : i32, i32
  }
  func.func @transform_1(%arg0: i32) -> (i32, i32) {
    %c0_i32 = arith.constant 0 : i32
    %c0_i32_0 = arith.constant 0 : i32
    return %arg0, %c0_i32 : i32, i32
  }
}

</mosaic_0001>

<bundles_post_ra>
// kernel: _identity_copy.1
= control target key start
LH: loop header
LB: loop body
LE: loop exit
PB: predicated region body
PF: predicated region fallthrough
CT: control target
= control target key end

     0   :  { %s30_s0 = inlined_call_operand.vmem [shape: f32[8,128], index: 0, kind: input, shape index: {}, may-alias: {0,1}]   ;;  %s31_s1 = inlined_call_operand.vmem [shape: f32[8,128], index: 1, kind: output, shape index: {}, may-alias: {0,1}]  }
   0x1   :  { %v8_v0 = vld [vmem:[%s30_s0] sm:$0xff] }
   0x2   :  { %9 = vst [vmem:[%s31_s1] sm:$0xff] %v8_v0 }

</bundles_post_ra>
